<compile_context>
chip_gen: v7x
topology: tpu7x:2x2x1
jax: 0.10.0
libtpu: 0.0.40
codegen_flags: <defaults>
</compile_context>

<pallas_src>
import functools

import jax
import jax.numpy as jnp
from jax.experimental import pallas as pl
from jax.experimental.pallas import tpu as pltpu


def _ceil_to(x, m):
    return (x + m - 1) // m * m


# --------------------------------------------------------------------------
# Fused Pallas kernel: matmul (MXU, bf16 in / f32 acc) + folded-BN affine +
# optional residual add + optional ReLU/PReLU epilogue, single store.
# --------------------------------------------------------------------------
def _fused_conv_kernel(*refs, mode, has_alpha, has_res):
    # mode: 0 = identity, 1 = ReLU, 2 = PReLU
    it = iter(refs)
    a_ref = next(it)                       # (tm, K)  bf16
    b_ref = next(it)                       # (K,  N)  bf16
    s_ref = next(it)                       # (1,  N)  f32  scale (BN)
    c_ref = next(it)                       # (1,  N)  f32  shift (BN + conv bias)
    al_ref = next(it) if has_alpha else None
    r_ref = next(it) if has_res else None  # (tm, N)  residual (bf16/f32)
    o_ref = next(it)                       # (tm, N)

    y = jnp.dot(a_ref[...], b_ref[...], preferred_element_type=jnp.float32)
    y = y * s_ref[...] + c_ref[...]                    # folded BN + bias
    if has_res:
        y = y + r_ref[...].astype(jnp.float32)         # fused skip connection
    if mode == 1:
        y = jnp.maximum(y, 0.0)
    elif mode == 2:
        y = jnp.where(y >= 0.0, y, al_ref[...] * y)
    o_ref[...] = y.astype(o_ref.dtype)


def fused_matmul(a, b, scale, shift, *, alpha=None, residual=None, mode=0,
                 out_dtype=jnp.bfloat16):
    """a: (M, K) bf16, b: (K, N) bf16 -> act((a@b)*scale+shift[+res]) (M, N)."""
    M, K = a.shape
    _, N = b.shape

    # Tile only the M (pixel) axis; keep the small K/N extents fully resident.
    if M >= 1024:
        tm = 512
    else:
        # keep >=2 grid steps so the M axis can shard across two TensorCores
        tm = max(8, _ceil_to(M, 16) // 2)
    Mp = _ceil_to(M, tm)
    Kr = _ceil_to(K, 16)     # bf16 sublane-friendly contraction dim
    Nr = _ceil_to(N, 8)

    if (Mp, Kr) != (M, K):
        a = jnp.pad(a, ((0, Mp - M), (0, Kr - K)))
    if (Kr, Nr) != (K, N):
        b = jnp.pad(b, ((0, Kr - K), (0, Nr - N)))

    def vec(v):
        v = v.astype(jnp.float32).reshape(1, N)
        return jnp.pad(v, ((0, 0), (0, Nr - N))) if Nr != N else v

    has_alpha = (mode == 2)
    has_res = residual is not None

    args = [a, b, vec(scale), vec(shift)]
    in_specs = [pl.BlockSpec((tm, Kr), lambda i: (i, 0)),
                pl.BlockSpec((Kr, Nr), lambda i: (0, 0)),
                pl.BlockSpec((1, Nr), lambda i: (0, 0)),
                pl.BlockSpec((1, Nr), lambda i: (0, 0))]
    if has_alpha:
        args.append(vec(alpha))
        in_specs.append(pl.BlockSpec((1, Nr), lambda i: (0, 0)))
    if has_res:
        r = residual
        if (Mp, Nr) != (M, N):
            r = jnp.pad(r, ((0, Mp - M), (0, Nr - N)))
        args.append(r)
        in_specs.append(pl.BlockSpec((tm, Nr), lambda i: (i, 0)))

    out = pl.pallas_call(
        functools.partial(_fused_conv_kernel, mode=mode,
                          has_alpha=has_alpha, has_res=has_res),
        out_shape=jax.ShapeDtypeStruct((Mp, Nr), out_dtype),
        grid_spec=pltpu.PrefetchScalarGridSpec(
            num_scalar_prefetch=0,
            grid=(Mp // tm,),
            in_specs=in_specs,
            out_specs=pl.BlockSpec((tm, Nr), lambda i: (i, 0))),
        compiler_params=pltpu.CompilerParams(
            dimension_semantics=("parallel",),
            vmem_limit_bytes=32 * 1024 * 1024),
    )(*args)
    if (Mp, Nr) != (M, N):
        out = out[:M, :N]
    return out


# --------------------------------------------------------------------------
# Conv / transposed-conv wrappers (im2col + fused Pallas matmul)
# --------------------------------------------------------------------------
def conv2d(x, w, *, stride=(1, 1), padding=(0, 0), dilation=(1, 1),
           scale=None, shift=None, alpha=None, residual=None, mode=0,
           out_dtype=jnp.bfloat16):
    """x: NHWC, w: (O, I, kH, kW) PyTorch layout. Epilogue fused in-kernel."""
    B, H, W, C = x.shape
    O, I, kH, kW = w.shape
    sh, sw = stride
    ph, pw = padding
    dh, dw = dilation
    OH = (H + 2 * ph - dh * (kH - 1) - 1) // sh + 1
    OW = (W + 2 * pw - dw * (kW - 1) - 1) // sw + 1

    xb = x.astype(jnp.bfloat16)
    if kH == 1 and kW == 1 and (sh, sw) == (1, 1) and (ph, pw) == (0, 0):
        a = xb.reshape(B * H * W, C)                 # 1x1 conv: no im2col
    else:
        xp = jnp.pad(xb, ((0, 0), (ph, ph), (pw, pw), (0, 0)))
        pats = []
        for i in range(kH):
            for j in range(kW):
                pats.append(xp[:, i * dh: i * dh + sh * (OH - 1) + 1: sh,
                               j * dw: j * dw + sw * (OW - 1) + 1: sw, :])
        # TODO(synk): the kH*kW taps could be folded into the kernel's
        # reduction instead of materializing this bf16 patch buffer.
        a = jnp.stack(pats, axis=3).reshape(B * OH * OW, kH * kW * C)

    wm = jnp.transpose(w, (2, 3, 1, 0)).reshape(kH * kW * I, O)
    wm = wm.astype(jnp.bfloat16)

    if scale is None:
        scale = jnp.ones((O,), jnp.float32)
    if shift is None:
        shift = jnp.zeros((O,), jnp.float32)
    res2 = residual.reshape(B * OH * OW, O) if residual is not None else None

    y = fused_matmul(a, wm, scale, shift, alpha=alpha, residual=res2,
                     mode=mode, out_dtype=out_dtype)
    return y.reshape(B, OH, OW, O)


def conv_transpose2d(x, w, *, stride=1, padding=0, output_padding=0,
                     scale=None, shift=None, alpha=None, residual=None,
                     mode=0, out_dtype=jnp.bfloat16):
    """x: NHWC, w: (I, O, kH, kW) PyTorch ConvTranspose2d layout."""
    B, H, W, C = x.shape
    I, O, kH, kW = w.shape
    s, p, op = stride, padding, output_padding
    if s == 1:
        xd = x
    else:
        Hd, Wd = (H - 1) * s + 1, (W - 1) * s + 1
        xd = jnp.zeros((B, Hd, Wd, C), x.dtype).at[:, ::s, ::s, :].set(x)
    xdp = jnp.pad(xd, ((0, 0),
                       (kH - 1 - p, kH - 1 - p + op),
                       (kW - 1 - p, kW - 1 - p + op),
                       (0, 0)))
    wf = jnp.transpose(w[:, :, ::-1, ::-1], (1, 0, 2, 3))   # (O, I, kH, kW)
    return conv2d(xdp, wf, scale=scale, shift=shift, alpha=alpha,
                  residual=residual, mode=mode, out_dtype=out_dtype)


# --------------------------------------------------------------------------
# Max-pool / unpool glue (PyTorch semantics)
# --------------------------------------------------------------------------
def maxpool2x2_with_indices(x):
    """x: NHWC -> (pooled NHWC, indices NHWC flat into H*W) like PyTorch."""
    N, H, W, C = x.shape
    Ho, Wo = H // 2, W // 2
    xr = x.reshape(N, Ho, 2, Wo, 2, C)
    win = jnp.transpose(xr, (0, 1, 3, 5, 2, 4)).reshape(N, Ho, Wo, C, 4)
    arg = jnp.argmax(win, axis=-1)
    vals = jnp.max(win, axis=-1)
    dh, dw = arg // 2, arg % 2
    ii = jnp.arange(Ho, dtype=jnp.int32)[None, :, None, None]
    jj = jnp.arange(Wo, dtype=jnp.int32)[None, None, :, None]
    idx = (2 * ii + dh) * W + (2 * jj + dw)
    return vals, idx


def max_unpool2x2(x, idx, out_h, out_w):
    """Inverse of maxpool2x2_with_indices (PyTorch MaxUnpool2d semantics)."""
    N, H, W, C = x.shape
    xf = jnp.transpose(x, (0, 3, 1, 2)).reshape(N * C, H * W)
    idxf = jnp.transpose(idx, (0, 3, 1, 2)).reshape(N * C, H * W)
    out = jnp.zeros((N * C, out_h * out_w), x.dtype)
    out = out.at[jnp.arange(N * C)[:, None], idxf].set(xf)
    out = out.reshape(N, C, out_h, out_w)
    return jnp.transpose(out, (0, 2, 3, 1))


# --------------------------------------------------------------------------
# Deterministic parameter construction
# --------------------------------------------------------------------------
class _KeyGen:
    def __init__(self, seed):
        self.key = jax.random.PRNGKey(seed)

    def __call__(self):
        self.key, sub = jax.random.split(self.key)
        return sub


_KG = _KeyGen(0)


def conv_weight(o, i, kh, kw):
    fan_in = i * kh * kw
    return jax.random.normal(_KG(), (o, i, kh, kw), jnp.float32) * (0.5 / fan_in ** 0.5)


def convt_weight(i, o, kh, kw):
    fan_in = i * kh * kw
    return jax.random.normal(_KG(), (i, o, kh, kw), jnp.float32) * (0.5 / fan_in ** 0.5)


def bias_param(c):
    return jax.random.normal(_KG(), (c,), jnp.float32) * 0.05


def bn_fold(c, eps=1e-5):
    gamma = 1.0 + 0.1 * jax.random.normal(_KG(), (c,), jnp.float32)
    beta = 0.05 * jax.random.normal(_KG(), (c,), jnp.float32)
    mean = 0.05 * jax.random.normal(_KG(), (c,), jnp.float32)
    var = jnp.abs(1.0 + 0.1 * jax.random.normal(_KG(), (c,), jnp.float32))
    scale = gamma / jnp.sqrt(var + eps)
    bias = beta - mean * scale
    return scale, bias


def make_initial_block(in_c=3, out_c=13):
    return dict(conv_w=conv_weight(out_c, in_c, 3, 3),
                conv_b=bias_param(out_c),
                bn=bn_fold(out_c),
                prelu=jnp.full((in_c + out_c,), 0.25, jnp.float32))


def make_rdd(dilation, in_c, out_c, down):
    red = in_c // 4 if down else out_c // 4
    return dict(dilation=dilation, in_c=in_c, out_c=out_c, down=down, red=red,
                w1=conv_weight(red, in_c, 1, 1),
                w2=conv_weight(red, red, 3, 3),
                b2=bias_param(red),
                w3=conv_weight(out_c, red, 1, 1),
                bn1=bn_fold(red),
                bn2=bn_fold(out_c),
                alpha=jnp.float32(0.25))


def make_as(in_c, out_c):
    red = in_c // 4
    return dict(in_c=in_c, out_c=out_c, red=red,
                w1=conv_weight(red, in_c, 1, 1),
                w21=conv_weight(red, red, 1, 5),
                w22=conv_weight(red, red, 5, 1),
                w3=conv_weight(out_c, red, 1, 1),
                bn1=bn_fold(red),
                bn2=bn_fold(out_c),
                a1=jnp.float32(0.25), a2=jnp.float32(0.25),
                a3=jnp.float32(0.25))


def make_ub(in_c, out_c):
    red = in_c // 4
    return dict(in_c=in_c, out_c=out_c, red=red,
                wt1=convt_weight(in_c, red, 1, 1),
                wt2=convt_weight(red, red, 3, 3),
                wt3=convt_weight(red, out_c, 1, 1),
                main_w=conv_weight(out_c, in_c, 1, 1),
                main_b=bias_param(out_c),
                bn1=bn_fold(red),
                bn2=bn_fold(out_c))


def make_enet(C):
    p = dict(init=make_initial_block(),
             b10=make_rdd(1, 16, 64, True),
             b11=make_rdd(1, 64, 64, False), b12=make_rdd(1, 64, 64, False),
             b13=make_rdd(1, 64, 64, False), b14=make_rdd(1, 64, 64, False),
             b20=make_rdd(1, 64, 128, True),
             b21=make_rdd(1, 128, 128, False), b22=make_rdd(2, 128, 128, False),
             b23=make_as(128, 128),
             b24=make_rdd(4, 128, 128, False), b25=make_rdd(1, 128, 128, False),
             b26=make_rdd(8, 128, 128, False),
             b27=make_as(128, 128),
             b28=make_rdd(16, 128, 128, False),
             b31=make_rdd(1, 128, 128, False), b32=make_rdd(2, 128, 128, False),
             b33=make_as(128, 128),
             b34=make_rdd(4, 128, 128, False), b35=make_rdd(1, 128, 128, False),
             b36=make_rdd(8, 128, 128, False),
             b37=make_as(128, 128),
             b38=make_rdd(16, 128, 128, False),
             b40=make_ub(128, 64),
             b41=make_rdd(1, 64, 64, False), b42=make_rdd(1, 64, 64, False),
             b50=make_ub(64, 16),
             b51=make_rdd(1, 16, 16, False),
             fullconv_w=convt_weight(16, C, 3, 3))
    return p


# --------------------------------------------------------------------------
# Block forward passes (NHWC, bf16 activations, epilogues fused into convs)
# --------------------------------------------------------------------------
def initial_block_fwd(x, p):
    s, b = p['bn']
    # conv + BatchNorm + per-channel PReLU (slopes 0..12) fused in one pass.
    main = conv2d(x, p['conv_w'], stride=(2, 2), padding=(1, 1),
                  scale=s, shift=b + p['conv_b'] * s,
                  alpha=p['prelu'][:13], mode=2)
    # Maxpool side branch (3 channels) + its PReLU slice: tiny plain-JAX glue.
    side, _ = maxpool2x2_with_indices(x)
    a_side = p['prelu'][13:]
    side = jnp.where(side >= 0.0, side, a_side * side).astype(main.dtype)
    return jnp.concatenate([main, side], axis=-1)


def rdd_fwd(x, p, relu=False):
    mode = 1 if relu else 2
    d = p['dilation']
    red, out_c, in_c = p['red'], p['out_c'], p['in_c']
    s1, b1 = p['bn1']                       # shared BN after conv1 AND conv2 (as in ref)
    s2, b2 = p['bn2']
    a_red = jnp.full((red,), p['alpha'], jnp.float32) if mode == 2 else None
    a_out = jnp.full((out_c,), p['alpha'], jnp.float32) if mode == 2 else None
    stride = 2 if p['down'] else 1

    # Skip branch (maxpool + zero-channel pad); fused into the last conv below.
    xc = x
    idx = None
    if p['down']:
        xc, idx = maxpool2x2_with_indices(xc)
    if in_c != out_c:
        xc = jnp.pad(xc, ((0, 0), (0, 0), (0, 0), (0, out_c - in_c)))

    y = conv2d(x, p['w1'], scale=s1, shift=b1, alpha=a_red, mode=mode)
    y = conv2d(y, p['w2'], stride=(stride, stride), padding=(d, d),
               dilation=(d, d), scale=s1, shift=b1 + p['b2'] * s1,
               alpha=a_red, mode=mode)
    # conv3 + BatchNorm2 + residual add + activation in one kernel pass.
    # Dropout2d: identity (eval mode).
    y = conv2d(y, p['w3'], scale=s2, shift=b2, alpha=a_out, mode=mode,
               residual=xc)
    return (y, idx) if p['down'] else y


def as_fwd(x, p):
    red, out_c = p['red'], p['out_c']
    s1, b1 = p['bn1']                       # shared BN after conv1 and conv22 (as in ref)
    s2, b2 = p['bn2']
    y = conv2d(x, p['w1'], scale=s1, shift=b1,
               alpha=jnp.full((red,), p['a1'], jnp.float32), mode=2)
    y = conv2d(y, p['w21'], padding=(0, 2))                  # no epilogue
    y = conv2d(y, p['w22'], padding=(2, 0), scale=s1, shift=b1,
               alpha=jnp.full((red,), p['a2'], jnp.float32), mode=2)
    # conv3 + BatchNorm2 + residual + PReLU3 fused (dropout = identity).
    y = conv2d(y, p['w3'], scale=s2, shift=b2,
               alpha=jnp.full((out_c,), p['a3'], jnp.float32), mode=2,
               residual=x)
    return y


def ub_fwd(x, indices, p):
    # relu=True for both UBNecks in ENet -> mode 1
    red, out_c = p['red'], p['out_c']
    s1, b1 = p['bn1']
    s2, b2 = p['bn2']
    # Skip branch: 1x1 conv (bias only) then max-unpool scatter (JAX glue).
    xc = conv2d(x, p['main_w'], shift=p['main_b'], mode=0)
    y = conv_transpose2d(x, p['wt1'], scale=s1, shift=b1, mode=1)
    y = conv_transpose2d(y, p['wt2'], stride=2, padding=1, output_padding=1,
                         scale=s1, shift=b1, mode=1)
    xc = max_unpool2x2(xc, indices, y.shape[1], y.shape[2])
    # convt3 + BatchNorm2 + unpooled skip + ReLU fused (dropout = identity).
    y = conv_transpose2d(y, p['wt3'], scale=s2, shift=b2, mode=1, residual=xc)
    return y


def enet_forward(x_nchw, params):
    x = jnp.transpose(x_nchw, (0, 2, 3, 1))       # NCHW -> NHWC
    x = initial_block_fwd(x, params['init'])
    x, i1 = rdd_fwd(x, params['b10'])
    x = rdd_fwd(x, params['b11'])
    x = rdd_fwd(x, params['b12'])
    x = rdd_fwd(x, params['b13'])
    x = rdd_fwd(x, params['b14'])
    x, i2 = rdd_fwd(x, params['b20'])
    x = rdd_fwd(x, params['b21'])
    x = rdd_fwd(x, params['b22'])
    x = as_fwd(x, params['b23'])
    x = rdd_fwd(x, params['b24'])
    x = rdd_fwd(x, params['b25'])
    x = rdd_fwd(x, params['b26'])
    x = as_fwd(x, params['b27'])
    x = rdd_fwd(x, params['b28'])
    x = rdd_fwd(x, params['b31'])
    x = rdd_fwd(x, params['b32'])
    x = as_fwd(x, params['b33'])
    x = rdd_fwd(x, params['b34'])
    x = rdd_fwd(x, params['b35'])
    x = rdd_fwd(x, params['b36'])
    x = as_fwd(x, params['b37'])
    x = rdd_fwd(x, params['b38'])
    x = ub_fwd(x, i2, params['b40'])
    x = rdd_fwd(x, params['b41'], relu=True)
    x = rdd_fwd(x, params['b42'], relu=True)
    x = ub_fwd(x, i1, params['b50'])
    x = rdd_fwd(x, params['b51'], relu=True)
    x = conv_transpose2d(x, params['fullconv_w'],
                         stride=2, padding=1, output_padding=1,
                         mode=0, out_dtype=jnp.float32)
    return jnp.transpose(x, (0, 3, 1, 2))         # back to NCHW


if __name__ == "__main__":
    C = 4
    params = make_enet(C)
    key = jax.random.PRNGKey(0)
    # Input spatial must be divisible by 8 (three stride-2 downsample stages).
    x = jax.random.normal(key, (2, 3, 32, 32), jnp.float32)
    y = enet_forward(x, params)
    y = jax.block_until_ready(y)
    assert y.shape == (2, C, 32, 32), y.shape
    assert bool(jnp.all(jnp.isfinite(y)))
    print("KERNEL_OK")
</pallas_src>

<mosaic_0001>
module attributes {stable_mosaic.version = 11 : i64} {
  func.func @_fused_conv_kernel(%arg0: i32, %arg1: memref<256x32xbf16, #tpu.memory_space<vmem>>, %arg2: memref<32x16xbf16, #tpu.memory_space<vmem>>, %arg3: memref<1x16xf32, #tpu.memory_space<vmem>>, %arg4: memref<1x16xf32, #tpu.memory_space<vmem>>, %arg5: memref<1x16xf32, #tpu.memory_space<vmem>>, %arg6: memref<256x16xbf16, #tpu.memory_space<vmem>>) attributes {dimension_semantics = [#tpu.dimension_semantics<parallel>], iteration_bounds = array<i64: 2>, scalar_prefetch = 0 : i64, scratch_operands = 0 : i64, tpu.core_type = #tpu.core_type<tc>, window_params = [{transform_indices = @transform_0, window_bounds = array<i64: 256, 32>}, {pipeline_mode = #tpu.pipeline_mode<synchronous>, transform_indices = @transform_1, window_bounds = array<i64: 32, 16>}, {pipeline_mode = #tpu.pipeline_mode<synchronous>, transform_indices = @transform_2, window_bounds = array<i64: 1, 16>}, {pipeline_mode = #tpu.pipeline_mode<synchronous>, transform_indices = @transform_3, window_bounds = array<i64: 1, 16>}, {pipeline_mode = #tpu.pipeline_mode<synchronous>, transform_indices = @transform_4, window_bounds = array<i64: 1, 16>}, {transform_indices = @transform_5, window_bounds = array<i64: 256, 16>}]} {
    %c0 = arith.constant 0 : index
    %c0_0 = arith.constant 0 : index
    %0 = vector.load %arg1[%c0, %c0_0] : memref<256x32xbf16, #tpu.memory_space<vmem>>, vector<256x32xbf16>
    %c0_1 = arith.constant 0 : index
    %c0_2 = arith.constant 0 : index
    %1 = vector.load %arg2[%c0_1, %c0_2] : memref<32x16xbf16, #tpu.memory_space<vmem>>, vector<32x16xbf16>
    %cst = arith.constant dense<0.000000e+00> : vector<256x16xf32>
    %2 = tpu.matmul %0, %1, %cst {dimension_numbers = #tpu.dot_dimension_numbers<[1], [0], [0], [1], [0, 0, 1, 1], [], []>} : vector<256x32xbf16>, vector<32x16xbf16>, vector<256x16xf32> -> vector<256x16xf32>
    %c0_3 = arith.constant 0 : index
    %c0_4 = arith.constant 0 : index
    %3 = vector.load %arg3[%c0_3, %c0_4] : memref<1x16xf32, #tpu.memory_space<vmem>>, vector<1x16xf32>
    %4 = vector.broadcast %3 : vector<1x16xf32> to vector<256x16xf32>
    %5 = arith.mulf %2, %4 : vector<256x16xf32>
    %c0_5 = arith.constant 0 : index
    %c0_6 = arith.constant 0 : index
    %6 = vector.load %arg4[%c0_5, %c0_6] : memref<1x16xf32, #tpu.memory_space<vmem>>, vector<1x16xf32>
    %7 = vector.broadcast %6 : vector<1x16xf32> to vector<256x16xf32>
    %8 = arith.addf %5, %7 : vector<256x16xf32>
    %cst_7 = arith.constant 0.000000e+00 : f32
    %9 = vector.broadcast %cst_7 : f32 to vector<256x16xf32>
    %10 = arith.cmpf oge, %8, %9 : vector<256x16xf32>
    %c0_8 = arith.constant 0 : index
    %c0_9 = arith.constant 0 : index
    %11 = vector.load %arg5[%c0_8, %c0_9] : memref<1x16xf32, #tpu.memory_space<vmem>>, vector<1x16xf32>
    %12 = vector.broadcast %11 : vector<1x16xf32> to vector<256x16xf32>
    %13 = arith.mulf %12, %8 : vector<256x16xf32>
    %14 = arith.select %10, %8, %13 : vector<256x16xi1>, vector<256x16xf32>
    %15 = arith.truncf %14 : vector<256x16xf32> to vector<256x16xbf16>
    %c0_10 = arith.constant 0 : index
    %c0_11 = arith.constant 0 : index
    %16 = vector.load %arg6[%c0_10, %c0_11] : memref<256x16xbf16, #tpu.memory_space<vmem>>, vector<256x16xbf16>
    tpu.vector_store %arg6[%c0_10, %c0_11], %15 {strides = array<i32>} : memref<256x16xbf16, #tpu.memory_space<vmem>>, vector<256x16xbf16>,
    return
  }
  func.func @transform_0(%arg0: i32) -> (i32, i32) {
    %c0_i32 = arith.constant 0 : i32
    %c0_i32_0 = arith.constant 0 : i32
    return %arg0, %c0_i32 : i32, i32
  }
  func.func @transform_1(%arg0: i32) -> (i32, i32) {
    %c0_i32 = arith.constant 0 : i32
    %c0_i32_0 = arith.constant 0 : i32
    %c0_i32_1 = arith.constant 0 : i32
    return %c0_i32, %c0_i32_0 : i32, i32
  }
  func.func @transform_2(%arg0: i32) -> (i32, i32) {
    %c0_i32 = arith.constant 0 : i32
    %c0_i32_0 = arith.constant 0 : i32
    %c0_i32_1 = arith.constant 0 : i32
    return %c0_i32, %c0_i32_0 : i32, i32
  }
  func.func @transform_3(%arg0: i32) -> (i32, i32) {
    %c0_i32 = arith.constant 0 : i32
    %c0_i32_0 = arith.constant 0 : i32
    %c0_i32_1 = arith.constant 0 : i32
    return %c0_i32, %c0_i32_0 : i32, i32
  }
  func.func @transform_4(%arg0: i32) -> (i32, i32) {
    %c0_i32 = arith.constant 0 : i32
    %c0_i32_0 = arith.constant 0 : i32
    %c0_i32_1 = arith.constant 0 : i32
    return %c0_i32, %c0_i32_0 : i32, i32
  }
  func.func @transform_5(%arg0: i32) -> (i32, i32) {
    %c0_i32 = arith.constant 0 : i32
    %c0_i32_0 = arith.constant 0 : i32
    return %arg0, %c0_i32 : i32, i32
  }
}

</mosaic_0001>

<bundles_post_ra>
// kernel: tpu_custom_call.1
= control target key start
LH: loop header
LB: loop body
LE: loop exit
PB: predicated region body
PF: predicated region fallthrough
CT: control target
= control target key end

     0   :  { %s1199_s18 = smov 0   ;;  %s1463_s0 = inlined_call_operand.vmem [shape: bf16[512,32], index: 0, kind: input, shape index: {}]   ;;  %s1464_s1 = inlined_call_operand.vmem [shape: bf16[32,16], index: 1, kind: input, shape index: {}]   ;;  %s1465_s2 = inlined_call_operand.vmem [shape: f32[1,16], index: 2, kind: input, shape index: {}]   ;;  %s1466_s3 = inlined_call_operand.vmem [shape: f32[1,16], index: 3, kind: input, shape index: {}]   ;;  %s1467_s4 = inlined_call_operand.vmem [shape: f32[1,16], index: 4, kind: input, shape index: {}]   ;;  %s1468_s5 = inlined_call_operand.vmem [shape: bf16[512,16], index: 5, kind: output, shape index: {}]  }
   0x1 LB: > { %s965_s19 = sadd.s32 4294967295, %s1167_s18   ;;  %p969_p0 = scmp.ge.s32.totalorder %s1167_s18, 1  ;;  %s1167_s18 = sphi %s1199_s18, %s15_s18  }
   0x2   : > { %p188_p1 = scmp.lt.s32.totalorder %s1167_s18, 3 }
   0x4   : > { %p189_p2 = pnand %p969_p0, %p188_p1 }
   0x5   : > { %v1143_v0 = vld [vmem:[%s1464_s1] sm:$0xff] (!%p189_p2)   ;;  %s970_s22 = sshll.u32 (!%p189_p2), %s965_s19, 5  ;;  %v1144_v1 = vld [vmem:[%s1464_s1 + $0x8] sm:$0xff] (!%p189_p2)   ;;  %vm357_vm0 = vcmask (!%p189_p2), 261120   ;;  %vm876_vm1 = vcmask (!%p189_p2), 125952  }
   0x6   : > { %192 = sbr.rel (%p189_p2) target bundleno = 286 (0x11e), region = 40  ;;  %p217_p3 = scmp.lt.s32.totalorder (!%p189_p2), %s970_s22, 63  ;;  %1095 = vmatprep.subr.bf16.mxu0 (!%p189_p2), %v1143_v0  ;;  %1131 = vmatprep.subr.bf16.mxu1 (!%p189_p2), %v1143_v0  ;;  %v1258_v18 = vld [vmem:[%s1465_s2] ss:$0 sm:$0xff] (!%p189_p2) }
   0x7   : > { %1096 = vmatpush3.bf16.msra.mxu0 (!%p189_p2), %v1143_v0  ;;  %1133 = vmatpush3.bf16.msra.mxu1 (!%p189_p2), %v1143_v0  ;;  %v1263_v20 = vld [vmem:[%s1466_s3] ss:$0 sm:$0xff] (!%p189_p2) }
   0x8   : > { %1097 = vmatprep.subr.bf16.mxu0 (!%p189_p2), %v1144_v1  ;;  %1132 = vmatprep.subr.bf16.mxu1 (!%p189_p2), %v1144_v1  ;;  %v1269_v24 = vld [vmem:[%s1467_s4] ss:$0 sm:$0xff] (!%p189_p2) }
   0xb   : > { %1098 = vmatpush3.bf16.msra.mxu0 (!%p189_p2), %v1144_v1  ;;  %1134 = vmatpush3.bf16.msra.mxu1 (!%p189_p2), %v1144_v1 }
   0xd   : > { %s1470_s22 = smov (!%p217_p3, %s970_s22), 63 }
   0xe   : > { %s971_s25 = sshll.u32 %s1470_s22, 2 }
   0xf   : > { %s1221_s28 = scalar_lea.vmem %s1463_s0, %s971_s25  ;;  %s1290_s12 = scalar_lea.vmem %s1468_s5, %s971_s25 }
  0x10   : > { %v1145_v2 = vld [vmem:[%s1221_s28] sm:$0xff]   ;;  %v1147_v4 = vld [vmem:[%s1221_s28 + $0x8] sm:$0xff]   ;;  %v1149_v6 = vld [vmem:[%s1221_s28 + $0x10] sm:$0xff]  }
  0x11   : > { %v1146_v3 = vld [vmem:[%s1221_s28 + $0x40] sm:$0xff]   ;;  %1099 = vmatprep.mubr.msk.bf16.mxu0 %vm357_vm0, %v1145_v2  ;;  %v1148_v5 = vld [vmem:[%s1221_s28 + $0x48] sm:$0xff]   ;;  %v1150_v7 = vld [vmem:[%s1221_s28 + $0x50] sm:$0xff]  }
  0x12   : > { %1115 = vmatprep.mubr.msk.bf16.mxu1 %vm357_vm0, %v1146_v3  ;;  %1100 = vmatmul.mubr.msk.bf16.vlgmr.msra.gmra.mrb[0].mxu0 %vm357_vm0, %v1147_v4  ;;  %v1151_v8 = vld [vmem:[%s1221_s28 + $0x18] sm:$0xff]   ;;  %v1153_v10 = vld [vmem:[%s1221_s28 + $0x20] sm:$0xff]   ;;  %v1155_v12 = vld [vmem:[%s1221_s28 + $0x28] sm:$0xff]  }
  0x13   : > { %1116 = vmatmul.mubr.msk.bf16.vlgmr.msra.gmra.mrb[0].mxu1 %vm357_vm0, %v1148_v5  ;;  %1103 = vmatprep.mubr.msk.bf16.mxu0 %vm357_vm0, %v1149_v6  ;;  %v1152_v9 = vld [vmem:[%s1221_s28 + $0x58] sm:$0xff]   ;;  %v1154_v11 = vld [vmem:[%s1221_s28 + $0x60] sm:$0xff]   ;;  %v1156_v13 = vld [vmem:[%s1221_s28 + $0x68] sm:$0xff]  }
  0x14   : > { %1119 = vmatprep.mubr.msk.bf16.mxu1 %vm357_vm0, %v1150_v7  ;;  %v1157_v14 = vld [vmem:[%s1221_s28 + $0x30] sm:$0xff]   ;;  %v1159_v16 = vld [vmem:[%s1221_s28 + $0x38] sm:$0xff]  }
  0x15   : > { %v1158_v15 = vld [vmem:[%s1221_s28 + $0x70] sm:$0xff]   ;;  %v1160_v17 = vld [vmem:[%s1221_s28 + $0x78] sm:$0xff]  }
  0x1a   : > { %1104 = vmatmul.mubr.msk.bf16.gmra.mrb[4].mxu0 %vm357_vm0, %v1151_v8 }
  0x1b   : > { %1120 = vmatmul.mubr.msk.bf16.gmra.mrb[4].mxu1 %vm357_vm0, %v1152_v9  ;;  %1107 = vmatprep.mubr.msk.bf16.mxu0 %vm357_vm0, %v1153_v10 }
  0x1c   : > { %1123 = vmatprep.mubr.msk.bf16.mxu1 %vm357_vm0, %v1154_v11 }
  0x22   : > { %1108 = vmatmul.mubr.msk.bf16.gmra.mrb[8].mxu0 %vm357_vm0, %v1155_v12 }
  0x23   : > { %1124 = vmatmul.mubr.msk.bf16.gmra.mrb[8].mxu1 %vm357_vm0, %v1156_v13  ;;  %1111 = vmatprep.mubr.msk.bf16.mxu0 %vm357_vm0, %v1157_v14 }
  0x24   : > { %1127 = vmatprep.mubr.msk.bf16.mxu1 %vm357_vm0, %v1158_v15 }
  0x2a   : > { %1112 = vmatmul.mubr.msk.bf16.gmra.mrb[12].mxu0 %vm357_vm0, %v1159_v16 }
  0x2b   : > { %1128 = vmatmul.mubr.msk.bf16.gmra.mrb[12].mxu1 %vm357_vm0, %v1160_v17 }
  0xe5   : > { %v1101_v19 = vpop.f32.mrb[0].mxu0 }
  0xe6   : > { %v576_v21 = vmul.f32 %v1101_v19, %v1258_v18  ;;  %v1117_v22 = vpop.f32.mrb[0].mxu1  ;;  %v440_v23 = vpop.f32.mrb[1].mxu0 }
  0xe7   : > { %v592_v25 = vmul.f32 %v1117_v22, %v1258_v18  ;;  %v574_v26 = vmul.f32 %v1258_v18, %v440_v23  ;;  %v504_v27 = vpop.f32.mrb[1].mxu1  ;;  %v1102_v28 = vpop.f32.mrb[2].mxu0 }
  0xe8   : > { %v615_v29 = vadd.f32 %v1263_v20, %v576_v21  ;;  %v590_v30 = vmul.f32 %v1258_v18, %v504_v27  ;;  %v577_v31 = vmul.f32 %v1102_v28, %v1258_v18  ;;  %v1118_v32 = vpop.f32.mrb[2].mxu1  ;;  %v443_v33 = vpop.f32.mrb[3].mxu0 }
  0xe9   : > { %v631_v34 = vadd.f32 %v1263_v20, %v592_v25  ;;  %v613_v35 = vadd.f32 %v1263_v20, %v574_v26  ;;  %v593_v36 = vmul.f32 %v1118_v32, %v1258_v18  ;;  %v575_v37 = vmul.f32 %v1258_v18, %v443_v33  ;;  %v507_v38 = vpop.f32.mrb[3].mxu1 }
  0xea   : > { %vm647_vm2 = vcmp.ge.f32.partialorder %v615_v29, 0.0  ;;  %v686_v39 = vmul.f32 %v1269_v24, %v615_v29  ;;  %v629_v40 = vadd.f32 %v1263_v20, %v590_v30  ;;  %v616_v41 = vadd.f32 %v1263_v20, %v577_v31 }
  0xeb   : > { %vm663_vm3 = vcmp.ge.f32.partialorder %v631_v34, 0.0  ;;  %v702_v42 = vmul.f32 %v1269_v24, %v631_v34  ;;  %vm645_vm4 = vcmp.ge.f32.partialorder %v613_v35, 0.0  ;;  %v684_v43 = vmul.f32 %v1269_v24, %v613_v35 }
  0xec   : > { %v718_v44 = vsel %vm647_vm2, %v615_v29, %v686_v39  ;;  %vm661_vm5 = vcmp.ge.f32.partialorder %v629_v40, 0.0  ;;  %v700_v45 = vmul.f32 %v1269_v24, %v629_v40  ;;  %vm648_vm6 = vcmp.ge.f32.partialorder %v616_v41, 0.0 }
  0xed   : > { %v1047_v46 = vpack.c.bf16 %v718_v44, %v718_v44  ;;  %v734_v47 = vsel %vm663_vm3, %v631_v34, %v702_v42  ;;  %v716_v48 = vsel %vm645_vm4, %v613_v35, %v684_v43  ;;  %v687_v49 = vmul.f32 %v1269_v24, %v616_v41  ;;  %v1105_v50 = vpop.f32.mrb[4].mxu0 }
  0xee   : > { %v1063_v51 = vpack.c.bf16 %v734_v47, %v734_v47  ;;  %v1045_v52 = vpack.c.bf16 %v716_v48, %v716_v48  ;;  %v732_v53 = vsel %vm661_vm5, %v629_v40, %v700_v45  ;;  %v632_v54 = vadd.f32 %v1263_v20, %v593_v36  ;;  %v1121_v55 = vpop.f32.mrb[4].mxu1  ;;  %v456_v56 = vpop.f32.mrb[5].mxu0 }
  0xef   : > { %879 = vst.msk [vmem:[%s1290_s12 + $0x8] sm:$0xf] %vm876_vm1, %v1047_v46  ;;  %v1061_v57 = vpack.c.bf16 %v732_v53, %v732_v53  ;;  %v719_v58 = vsel %vm648_vm6, %v616_v41, %v687_v49  ;;  %v614_v59 = vadd.f32 %v1263_v20, %v575_v37  ;;  %v591_v60 = vmul.f32 %v1258_v18, %v507_v38  ;;  %v520_v61 = vpop.f32.mrb[5].mxu1  ;;  %v1106_v62 = vpop.f32.mrb[6].mxu0 }
  0xf0   : > { %895 = vst.msk [vmem:[%s1290_s12 + $0x48] sm:$0xf] %vm876_vm1, %v1063_v51  ;;  %877 = vst.msk [vmem:[%s1290_s12] sm:$0xf] %vm876_vm1, %v1045_v52  ;;  %v1048_v63 = vpack.c.bf16 %v719_v58, %v719_v58  ;;  %vm664_vm7 = vcmp.ge.f32.partialorder %v632_v54, 0.0  ;;  %v703_v0 = vmul.f32 %v1269_v24, %v632_v54  ;;  %v580_v1 = vmul.f32 %v1105_v50, %v1258_v18  ;;  %v1122_v2 = vpop.f32.mrb[6].mxu1 }
  0xf1   : > { %v459_v3 = vpop.f32.mrb[7].mxu0  ;;  %893 = vst.msk [vmem:[%s1290_s12 + $0x40] sm:$0xf] %vm876_vm1, %v1061_v57  ;;  %vm646_vm8 = vcmp.ge.f32.partialorder %v614_v59, 0.0  ;;  %v685_v4 = vmul.f32 %v1269_v24, %v614_v59  ;;  %v630_v5 = vadd.f32 %v1263_v20, %v591_v60  ;;  %v596_v6 = vmul.f32 %v1121_v55, %v1258_v18  ;;  %v523_v7 = vpop.f32.mrb[7].mxu1 }
  0xf2   : > { %880 = vst.msk [vmem:[%s1290_s12 + $0xc] sm:$0xf] %vm876_vm1, %v1048_v63  ;;  %v735_v8 = vsel %vm664_vm7, %v632_v54, %v703_v0  ;;  %v619_v9 = vadd.f32 %v1263_v20, %v580_v1  ;;  %v578_v10 = vmul.f32 %v1258_v18, %v456_v56  ;;  %v594_v11 = vmul.f32 %v1258_v18, %v520_v61 }
  0xf3   : > { %v1064_v12 = vpack.c.bf16 %v735_v8, %v735_v8  ;;  %v717_v13 = vsel %vm646_vm8, %v614_v59, %v685_v4  ;;  %vm662_vm9 = vcmp.ge.f32.partialorder %v630_v5, 0.0  ;;  %v701_v14 = vmul.f32 %v1269_v24, %v630_v5 }
  0xf4   : > { %v1046_v15 = vpack.c.bf16 %v717_v13, %v717_v13  ;;  %vm651_vm10 = vcmp.ge.f32.partialorder %v619_v9, 0.0  ;;  %v690_v16 = vmul.f32 %v1269_v24, %v619_v9  ;;  %v635_v17 = vadd.f32 %v1263_v20, %v596_v6 }
  0xf5   : > { %896 = vst.msk [vmem:[%s1290_s12 + $0x4c] sm:$0xf] %vm876_vm1, %v1064_v12  ;;  %v733_v19 = vsel %vm662_vm9, %v630_v5, %v701_v14  ;;  %v617_v21 = vadd.f32 %v1263_v20, %v578_v10  ;;  %v633_v22 = vadd.f32 %v1263_v20, %v594_v11  ;;  %v581_v23 = vmul.f32 %v1106_v62, %v1258_v18  ;;  %v1109_v25 = vpop.f32.mrb[8].mxu0 }
  0xf6   : > { %878 = vst.msk [vmem:[%s1290_s12 + $0x4] sm:$0xf] %vm876_vm1, %v1046_v15  ;;  %v1062_v26 = vpack.c.bf16 %v733_v19, %v733_v19  ;;  %v722_v27 = vsel %vm651_vm10, %v619_v9, %v690_v16  ;;  %vm667_vm11 = vcmp.ge.f32.partialorder %v635_v17, 0.0  ;;  %v706_v28 = vmul.f32 %v1269_v24, %v635_v17  ;;  %v1125_v29 = vpop.f32.mrb[8].mxu1  ;;  %v472_v30 = vpop.f32.mrb[9].mxu0 }
  0xf7   : > { %v1051_v31 = vpack.c.bf16 %v722_v27, %v722_v27  ;;  %vm649_vm12 = vcmp.ge.f32.partialorder %v617_v21, 0.0  ;;  %v688_v32 = vmul.f32 %v1269_v24, %v617_v21  ;;  %vm665_vm13 = vcmp.ge.f32.partialorder %v633_v22, 0.0  ;;  %v536_v33 = vpop.f32.mrb[9].mxu1  ;;  %v1327_v34 = vpop.f32.mrb[10].mxu0 }
  0xf8   : > { %894 = vst.msk [vmem:[%s1290_s12 + $0x44] sm:$0xf] %vm876_vm1, %v1062_v26  ;;  %v738_v35 = vsel %vm667_vm11, %v635_v17, %v706_v28  ;;  %v704_v36 = vmul.f32 %v1269_v24, %v633_v22  ;;  %v620_v37 = vadd.f32 %v1263_v20, %v581_v23  ;;  %v597_v38 = vmul.f32 %v1122_v2, %v1258_v18  ;;  %v1126_v39 = vpop.f32.mrb[10].mxu1  ;;  %v475_v40 = vpop.f32.mrb[11].mxu0 }
  0xf9   : > { %883 = vst.msk [vmem:[%s1290_s12 + $0x18] sm:$0xf] %vm876_vm1, %v1051_v31  ;;  %v1067_v41 = vpack.c.bf16 %v738_v35, %v738_v35  ;;  %v720_v42 = vsel %vm649_vm12, %v617_v21, %v688_v32  ;;  %v579_v43 = vmul.f32 %v1258_v18, %v459_v3  ;;  %v595_v44 = vmul.f32 %v1258_v18, %v523_v7  ;;  %v1338_v45 = vpop.f32.mrb[11].mxu1 }
  0xfa   : > { %v1049_v46 = vpack.c.bf16 %v720_v42, %v720_v42  ;;  %v736_v47 = vsel %vm665_vm13, %v633_v22, %v704_v36  ;;  %vm652_vm14 = vcmp.ge.f32.partialorder %v620_v37, 0.0  ;;  %v691_v48 = vmul.f32 %v1269_v24, %v620_v37 }
  0xfb   : > { %899 = vst.msk [vmem:[%s1290_s12 + $0x58] sm:$0xf] %vm876_vm1, %v1067_v41  ;;  %v1065_v49 = vpack.c.bf16 %v736_v47, %v736_v47  ;;  %v636_v50 = vadd.f32 %v1263_v20, %v597_v38  ;;  %v618_v51 = vadd.f32 %v1263_v20, %v579_v43  ;;  %v634_v52 = vadd.f32 %v1263_v20, %v595_v44 }
  0xfc   : > { %881 = vst.msk [vmem:[%s1290_s12 + $0x10] sm:$0xf] %vm876_vm1, %v1049_v46  ;;  %v723_v53 = vsel %vm652_vm14, %v620_v37, %v691_v48  ;;  %v584_v54 = vmul.f32 %v1109_v25, %v1258_v18  ;;  %v600_v55 = vmul.f32 %v1125_v29, %v1258_v18  ;;  %v582_v56 = vmul.f32 %v1258_v18, %v472_v30 }
  0xfd   : > { %897 = vst.msk [vmem:[%s1290_s12 + $0x50] sm:$0xf] %vm876_vm1, %v1065_v49  ;;  %v1052_v57 = vpack.c.bf16 %v723_v53, %v723_v53  ;;  %vm668_vm15 = vcmp.ge.f32.partialorder %v636_v50, 0.0  ;;  %v707_v58 = vmul.f32 %v1269_v24, %v636_v50  ;;  %vm650_vm0 = vcmp.ge.f32.partialorder %v618_v51, 0.0  ;;  %v1113_v59 = vpop.f32.mrb[12].mxu0 }
  0xfe   : > { %v689_v60 = vmul.f32 %v1269_v24, %v618_v51  ;;  %vm666_vm2 = vcmp.ge.f32.partialorder %v634_v52, 0.0  ;;  %v705_v61 = vmul.f32 %v1269_v24, %v634_v52  ;;  %v623_v62 = vadd.f32 %v1263_v20, %v584_v54  ;;  %v1129_v63 = vpop.f32.mrb[12].mxu1  ;;  %v488_v0 = vpop.f32.mrb[13].mxu0 }
  0xff   : > { %884 = vst.msk [vmem:[%s1290_s12 + $0x1c] sm:$0xf] %vm876_vm1, %v1052_v57  ;;  %v739_v1 = vsel %vm668_vm15, %v636_v50, %v707_v58  ;;  %v639_v2 = vadd.f32 %v1263_v20, %v600_v55  ;;  %v621_v3 = vadd.f32 %v1263_v20, %v582_v56  ;;  %v598_v4 = vmul.f32 %v1258_v18, %v536_v33  ;;  %v1363_v5 = vpop.f32.mrb[13].mxu1  ;;  %v1365_v6 = vpop.f32.mrb[14].mxu0 }
 0x100   : > { %v1068_v7 = vpack.c.bf16 %v739_v1, %v739_v1  ;;  %v721_v8 = vsel %vm650_vm0, %v618_v51, %v689_v60  ;;  %v737_v9 = vsel %vm666_vm2, %v634_v52, %v705_v61  ;;  %vm655_vm3 = vcmp.ge.f32.partialorder %v623_v62, 0.0  ;;  %v1368_v10 = vpop.f32.mrb[14].mxu1  ;;  %v1370_v11 = vpop.f32.mrb[15].mxu0 }
 0x101   : > { %v1050_v12 = vpack.c.bf16 %v721_v8, %v721_v8  ;;  %v1066_v13 = vpack.c.bf16 %v737_v9, %v737_v9  ;;  %v694_v14 = vmul.f32 %v1269_v24, %v623_v62  ;;  %vm671_vm4 = vcmp.ge.f32.partialorder %v639_v2, 0.0  ;;  %v1373_v15 = vpop.f32.mrb[15].mxu1 }
 0x102   : > { %900 = vst.msk [vmem:[%s1290_s12 + $0x5c] sm:$0xf] %vm876_vm1, %v1068_v7  ;;  %v710_v16 = vmul.f32 %v1269_v24, %v639_v2  ;;  %vm653_vm5 = vcmp.ge.f32.partialorder %v621_v3, 0.0  ;;  %v692_v17 = vmul.f32 %v1269_v24, %v621_v3  ;;  %v637_v19 = vadd.f32 %v1263_v20, %v598_v4 }
 0x103   : > { %882 = vst.msk [vmem:[%s1290_s12 + $0x14] sm:$0xf] %vm876_vm1, %v1050_v12  ;;  %898 = vst.msk [vmem:[%s1290_s12 + $0x54] sm:$0xf] %vm876_vm1, %v1066_v13  ;;  %v726_v21 = vsel %vm655_vm3, %v623_v62, %v694_v14  ;;  %v585_v22 = vmul.f32 %v1327_v34, %v1258_v18  ;;  %v601_v23 = vmul.f32 %v1126_v39, %v1258_v18 }
 0x104   : > { %v583_v25 = vmul.f32 %v1258_v18, %v475_v40  ;;  %v1055_v26 = vpack.c.bf16 %v726_v21, %v726_v21  ;;  %v742_v27 = vsel %vm671_vm4, %v639_v2, %v710_v16  ;;  %v724_v28 = vsel %vm653_vm5, %v621_v3, %v692_v17 }
 0x105   : > { %vm669_vm6 = vcmp.ge.f32.partialorder %v637_v19, 0.0  ;;  %v1071_v29 = vpack.c.bf16 %v742_v27, %v742_v27  ;;  %v1053_v30 = vpack.c.bf16 %v724_v28, %v724_v28  ;;  %v708_v31 = vmul.f32 %v1269_v24, %v637_v19 }
 0x106   : > { %v624_v32 = vadd.f32 %v1263_v20, %v585_v22  ;;  %887 = vst.msk [vmem:[%s1290_s12 + $0x28] sm:$0xf] %vm876_vm1, %v1055_v26  ;;  %v640_v33 = vadd.f32 %v1263_v20, %v601_v23  ;;  %v622_v34 = vadd.f32 %v1263_v20, %v583_v25  ;;  %v599_v35 = vmul.f32 %v1258_v18, %v1338_v45 }
 0x107   : > { %v588_v36 = vmul.f32 %v1113_v59, %v1258_v18  ;;  %903 = vst.msk [vmem:[%s1290_s12 + $0x68] sm:$0xf] %vm876_vm1, %v1071_v29  ;;  %885 = vst.msk [vmem:[%s1290_s12 + $0x20] sm:$0xf] %vm876_vm1, %v1053_v30  ;;  %v740_v37 = vsel %vm669_vm6, %v637_v19, %v708_v31  ;;  %v604_v39 = vmul.f32 %v1129_v63, %v1258_v18 }
 0x108   : > { %vm656_vm7 = vcmp.ge.f32.partialorder %v624_v32, 0.0  ;;  %v695_v38 = vmul.f32 %v1269_v24, %v624_v32  ;;  %v1069_v40 = vpack.c.bf16 %v740_v37, %v740_v37  ;;  %vm672_vm8 = vcmp.ge.f32.partialorder %v640_v33, 0.0 }
 0x109   : > { %v711_v41 = vmul.f32 %v1269_v24, %v640_v33  ;;  %vm654_vm9 = vcmp.ge.f32.partialorder %v622_v34, 0.0  ;;  %v693_v43 = vmul.f32 %v1269_v24, %v622_v34  ;;  %v638_v44 = vadd.f32 %v1263_v20, %v599_v35 }
 0x10a   : > { %v727_v42 = vsel %vm656_vm7, %v624_v32, %v695_v38  ;;  %v627_v45 = vadd.f32 %v1263_v20, %v588_v36  ;;  %901 = vst.msk [vmem:[%s1290_s12 + $0x60] sm:$0xf] %vm876_vm1, %v1069_v40  ;;  %v643_v48 = vadd.f32 %v1263_v20, %v604_v39  ;;  %v586_v49 = vmul.f32 %v1258_v18, %v488_v0 }
 0x10b   : > { %v1056_v46 = vpack.c.bf16 %v727_v42, %v727_v42  ;;  %v743_v47 = vsel %vm672_vm8, %v640_v33, %v711_v41  ;;  %v725_v51 = vsel %vm654_vm9, %v622_v34, %v693_v43  ;;  %vm670_vm10 = vcmp.ge.f32.partialorder %v638_v44, 0.0 }
 0x10c   : > { %v1072_v50 = vpack.c.bf16 %v743_v47, %v743_v47  ;;  %v709_v52 = vmul.f32 %v1269_v24, %v638_v44  ;;  %v1054_v53 = vpack.c.bf16 %v725_v51, %v725_v51  ;;  %vm659_vm11 = vcmp.ge.f32.partialorder %v627_v45, 0.0 }
 0x10d   : > { %888 = vst.msk [vmem:[%s1290_s12 + $0x2c] sm:$0xf] %vm876_vm1, %v1056_v46  ;;  %v698_v54 = vmul.f32 %v1269_v24, %v627_v45  ;;  %vm675_vm12 = vcmp.ge.f32.partialorder %v643_v48, 0.0  ;;  %v714_v56 = vmul.f32 %v1269_v24, %v643_v48  ;;  %v625_v57 = vadd.f32 %v1263_v20, %v586_v49 }
 0x10e   : > { %904 = vst.msk [vmem:[%s1290_s12 + $0x6c] sm:$0xf] %vm876_vm1, %v1072_v50  ;;  %v741_v55 = vsel %vm670_vm10, %v638_v44, %v709_v52  ;;  %v602_v58 = vmul.f32 %v1258_v18, %v1363_v5  ;;  %886 = vst.msk [vmem:[%s1290_s12 + $0x24] sm:$0xf] %vm876_vm1, %v1054_v53  ;;  %v589_v61 = vmul.f32 %v1365_v6, %v1258_v18 }
 0x10f   : > { %v1070_v59 = vpack.c.bf16 %v741_v55, %v741_v55  ;;  %v730_v60 = vsel %vm659_vm11, %v627_v45, %v698_v54  ;;  %v605_v62 = vmul.f32 %v1368_v10, %v1258_v18  ;;  %v746_v0 = vsel %vm675_vm12, %v643_v48, %v714_v56 }
 0x110   : > { %v1059_v63 = vpack.c.bf16 %v730_v60, %v730_v60  ;;  %vm657_vm13 = vcmp.ge.f32.partialorder %v625_v57, 0.0  ;;  %v696_v1 = vmul.f32 %v1269_v24, %v625_v57  ;;  %v1075_v2 = vpack.c.bf16 %v746_v0, %v746_v0 }
 0x111   : > { %902 = vst.msk [vmem:[%s1290_s12 + $0x64] sm:$0xf] %vm876_vm1, %v1070_v59  ;;  %v641_v3 = vadd.f32 %v1263_v20, %v602_v58  ;;  %v628_v4 = vadd.f32 %v1263_v20, %v589_v61  ;;  %v644_v5 = vadd.f32 %v1263_v20, %v605_v62  ;;  %v587_v7 = vmul.f32 %v1258_v18, %v1370_v11 }
 0x112   : > { %891 = vst.msk [vmem:[%s1290_s12 + $0x38] sm:$0xf] %vm876_vm1, %v1059_v63  ;;  %v728_v6 = vsel %vm657_vm13, %v625_v57, %v696_v1  ;;  %v603_v8 = vmul.f32 %v1258_v18, %v1373_v15  ;;  %907 = vst.msk [vmem:[%s1290_s12 + $0x78] sm:$0xf] %vm876_vm1, %v1075_v2 }
 0x113   : > { %v1057_v9 = vpack.c.bf16 %v728_v6, %v728_v6  ;;  %vm673_vm14 = vcmp.ge.f32.partialorder %v641_v3, 0.0  ;;  %v712_v10 = vmul.f32 %v1269_v24, %v641_v3  ;;  %vm660_vm15 = vcmp.ge.f32.partialorder %v628_v4, 0.0 }
 0x114   : > { %v699_v12 = vmul.f32 %v1269_v24, %v628_v4  ;;  %vm676_vm0 = vcmp.ge.f32.partialorder %v644_v5, 0.0  ;;  %v715_v13 = vmul.f32 %v1269_v24, %v644_v5  ;;  %v626_v11 = vadd.f32 %v1263_v20, %v587_v7 }
 0x115   : > { %889 = vst.msk [vmem:[%s1290_s12 + $0x30] sm:$0xf] %vm876_vm1, %v1057_v9  ;;  %v744_v18 = vsel %vm673_vm14, %v641_v3, %v712_v10  ;;  %v642_v14 = vadd.f32 %v1263_v20, %v603_v8 }
 0x116   : > { %v1073_v15 = vpack.c.bf16 %v744_v18, %v744_v18  ;;  %v731_v16 = vsel %vm660_vm15, %v628_v4, %v699_v12  ;;  %v747_v17 = vsel %vm676_vm0, %v644_v5, %v715_v13  ;;  %vm658_vm2 = vcmp.ge.f32.partialorder %v626_v11, 0.0 }
 0x117   : > { %v1060_v19 = vpack.c.bf16 %v731_v16, %v731_v16  ;;  %v1076_v21 = vpack.c.bf16 %v747_v17, %v747_v17  ;;  %v697_v22 = vmul.f32 %v1269_v24, %v626_v11  ;;  %vm674_vm3 = vcmp.ge.f32.partialorder %v642_v14, 0.0 }
 0x118   : > { %905 = vst.msk [vmem:[%s1290_s12 + $0x70] sm:$0xf] %vm876_vm1, %v1073_v15  ;;  %v713_v23 = vmul.f32 %v1269_v24, %v642_v14 }
 0x119   : > { %892 = vst.msk [vmem:[%s1290_s12 + $0x3c] sm:$0xf] %vm876_vm1, %v1060_v19  ;;  %908 = vst.msk [vmem:[%s1290_s12 + $0x7c] sm:$0xf] %vm876_vm1, %v1076_v21  ;;  %v729_v20 = vsel %vm658_vm2, %v626_v11, %v697_v22 }
 0x11a   : > { %v1058_v25 = vpack.c.bf16 %v729_v20, %v729_v20  ;;  %v745_v26 = vsel %vm674_vm3, %v642_v14, %v713_v23 }
 0x11b   : > { %v1074_v27 = vpack.c.bf16 %v745_v26, %v745_v26 }
 0x11c   : > { %890 = vst.msk [vmem:[%s1290_s12 + $0x34] sm:$0xf] %vm876_vm1, %v1058_v25 }
 0x11d   : > { %906 = vst.msk [vmem:[%s1290_s12 + $0x74] sm:$0xf] %vm876_vm1, %v1074_v27 }
 0x11e PF: > { %s15_s18 = sadd.s32 1, %s1167_s18  }
 0x11f   : > { %p12_p4 = scmp.ge.s32.totalorder %s15_s18, 4  }
 0x121   :  { %14 = sbr.rel (!%p12_p4) target bundleno = 1 (0x1), region = 70 }

</bundles_post_ra>
